<compile_context>
chip_gen: v7x
topology: tpu7x:2x2x1
jax: 0.10.0
libtpu: 0.0.40
codegen_flags: <defaults>
</compile_context>

<pallas_src>
import functools

import jax
import jax.numpy as jnp
from jax.experimental import pallas as pl
from jax.experimental.pallas import tpu as pltpu


# ----------------------------------------------------------------------------
# Kernels
# ----------------------------------------------------------------------------
def generator_fused_kernel(*refs, num_hidden_layers):
    """Whole MLP in one grid step per batch tile (all weights VMEM-resident)."""
    if num_hidden_layers > 0:
        (z_ref, w_in_ref, b_in_ref, w_h_ref, b_h_ref,
         w_out_ref, b_out_ref, out_ref) = refs
    else:
        z_ref, w_in_ref, b_in_ref, w_out_ref, b_out_ref, out_ref = refs
        w_h_ref = b_h_ref = None

    # fc_in + ReLU   (dropout == identity in eval mode)
    # TODO(synk): nn.Dropout training-mode masking/scaling omitted (inference semantics).
    h = jnp.dot(z_ref[...], w_in_ref[...], preferred_element_type=jnp.float32)
    h = jnp.maximum(h + b_in_ref[...], 0.0)

    # hidden stack: h = ReLU(h @ W_l + b_l)   (static unrolled loop)
    for l in range(num_hidden_layers):
        h = jnp.dot(h.astype(jnp.bfloat16), w_h_ref[l],
                    preferred_element_type=jnp.float32)
        h = jnp.maximum(h + b_h_ref[l:l + 1, :], 0.0)

    # fc_out (no activation)
    o = jnp.dot(h.astype(jnp.bfloat16), w_out_ref[...],
                preferred_element_type=jnp.float32)
    out_ref[...] = (o + b_out_ref[...]).astype(out_ref.dtype)


def generator_streamed_kernel(z_ref, w_in_ref, b_in_ref, w_h_ref, b_h_ref,
                              w_out_ref, b_out_ref, out_ref, h_ref):
    """Layer-streaming variant: grid = (batch_tiles, L); one hidden-layer
    weight tile is DMA'd per grid step; h lives in a VMEM scratch."""
    l = pl.program_id(1)

    @pl.when(l == 0)
    def _():
        h0 = jnp.dot(z_ref[...], w_in_ref[...],
                     preferred_element_type=jnp.float32)
        h_ref[...] = jnp.maximum(h0 + b_in_ref[...], 0.0)

    h = jnp.dot(h_ref[...].astype(jnp.bfloat16), w_h_ref[0],
                preferred_element_type=jnp.float32)
    h_ref[...] = jnp.maximum(h + b_h_ref[pl.ds(l, 1), :], 0.0)

    @pl.when(l == pl.num_programs(1) - 1)
    def _():
        o = jnp.dot(h_ref[...].astype(jnp.bfloat16), w_out_ref[...],
                    preferred_element_type=jnp.float32)
        out_ref[...] = (o + b_out_ref[...]).astype(out_ref.dtype)


# ----------------------------------------------------------------------------
# Wrapper helpers
# ----------------------------------------------------------------------------
def _round_up(x, m):
    return ((x + m - 1) // m) * m


def _pad2(a, rows, cols):
    return jnp.pad(a, ((0, rows - a.shape[0]), (0, cols - a.shape[1])))


def _resident(shape, grid_rank):
    """Constant-index (VMEM-resident) spec, single-buffered to halve weight VMEM."""
    zeros = (0,) * len(shape)
    idx = (lambda i: zeros) if grid_rank == 1 else (lambda i, l: zeros)
    try:
        return pl.BlockSpec(shape, idx, pipeline_mode=pl.Buffered(1))
    except (TypeError, ValueError, AttributeError):
        # older jax without pipeline_mode: fall back to default buffering
        return pl.BlockSpec(shape, idx)


def prepare_params(params, *, num_hidden_layers, hidden_align=None):
    """One-time pad + bf16 cast of the weights. Call ONCE, reuse across forwards."""
    ld, hs = params["w_in"].shape
    od = params["w_out"].shape[1]
    if hidden_align is None:
        # 256-wide MXU passes on v6e/v7x when the hidden dim is already large.
        hidden_align = 256 if hs >= 256 else 128
    hs_p = _round_up(hs, hidden_align)
    od_p = _round_up(od, 128)

    prepped = {
        "w_in": _pad2(params["w_in"], ld, hs_p).astype(jnp.bfloat16),
        "b_in": _pad2(params["b_in"].reshape(1, -1), 1, hs_p).astype(jnp.float32),
        "w_out": _pad2(params["w_out"], hs_p, od_p).astype(jnp.bfloat16),
        "b_out": _pad2(params["b_out"].reshape(1, -1), 1, od_p).astype(jnp.float32),
    }
    if num_hidden_layers > 0:
        prepped["w_h"] = jnp.pad(
            params["w_h"], ((0, 0), (0, hs_p - hs), (0, hs_p - hs))
        ).astype(jnp.bfloat16)
        prepped["b_h"] = jnp.pad(
            params["b_h"], ((0, 0), (0, hs_p - hs))
        ).astype(jnp.float32)

    dims = {"latent": ld, "hidden": hs, "hidden_p": hs_p, "out": od, "out_p": od_p}
    return prepped, dims


def generator_forward(z, prepped, dims, *, num_hidden_layers, block_batch=256,
                      weight_stream_limit_bytes=40 << 20, training=False):
    """Forward pass. `prepped`/`dims` come from prepare_params (called once)."""
    # TODO(synk): training-mode dropout not implemented (forward uses eval semantics).
    assert not training, "only inference (eval) mode is implemented"

    B, ld = z.shape
    assert ld == dims["latent"]
    hs_p, od_p, od = dims["hidden_p"], dims["out_p"], dims["out"]
    L = num_hidden_layers

    # --- balanced batch tiling, 16-row aligned; >=2 tiles for decent batches
    #     so the "parallel" axis can shard across v7x's 2 TensorCores.
    n_tiles = -(-B // block_batch)
    if B >= 32:
        n_tiles = max(n_tiles, 2)
    tm = _round_up(-(-B // n_tiles), 16)
    B_p = n_tiles * tm
    z_p = jnp.pad(z, ((0, B_p - B), (0, 0))).astype(jnp.bfloat16)

    # --- choose fused (all weights resident) vs layer-streamed (v7x VMEM budget)
    stream_layers = (L >= 2 and L * hs_p * hs_p * 2 > weight_stream_limit_bytes)

    if not stream_layers:
        grid = (n_tiles,)
        dim_sem = ("parallel",)
        kernel = functools.partial(generator_fused_kernel, num_hidden_layers=L)
        operands = [z_p, prepped["w_in"], prepped["b_in"]]
        in_specs = [
            pl.BlockSpec((tm, ld), lambda i: (i, 0)),
            _resident((ld, hs_p), 1),
            _resident((1, hs_p), 1),
        ]
        if L > 0:
            operands += [prepped["w_h"], prepped["b_h"]]
            in_specs += [_resident((L, hs_p, hs_p), 1), _resident((L, hs_p), 1)]
        operands += [prepped["w_out"], prepped["b_out"]]
        in_specs += [_resident((hs_p, od_p), 1), _resident((1, od_p), 1)]
        out_spec = pl.BlockSpec((tm, od_p), lambda i: (i, 0))
        scratch = []
        w_h_vmem = L * hs_p * hs_p * 2                    # resident, single-buffered
    else:
        grid = (n_tiles, L)
        dim_sem = ("parallel", "arbitrary")
        kernel = generator_streamed_kernel
        operands = [z_p, prepped["w_in"], prepped["b_in"], prepped["w_h"],
                    prepped["b_h"], prepped["w_out"], prepped["b_out"]]
        in_specs = [
            pl.BlockSpec((tm, ld), lambda i, l: (i, 0)),
            _resident((ld, hs_p), 2),
            _resident((1, hs_p), 2),
            # one hidden layer per grid step, default double-buffering so the
            # next layer's DMA overlaps this layer's matmul
            pl.BlockSpec((1, hs_p, hs_p), lambda i, l: (l, 0, 0)),
            _resident((L, hs_p), 2),                      # biases are tiny: keep resident
            _resident((hs_p, od_p), 2),
            _resident((1, od_p), 2),
        ]
        out_spec = pl.BlockSpec((tm, od_p), lambda i, l: (i, 0))
        scratch = [pltpu.VMEM((tm, hs_p), jnp.float32)]   # carried activations
        w_h_vmem = 2 * hs_p * hs_p * 2                    # 1 layer, double-buffered

    # --- explicit scoped-VMEM budget (defaults: 16 MiB v5e / 32 MiB v6e)
    resident = (ld * hs_p + hs_p * od_p) * 2 + (L + 1) * hs_p * 4 + od_p * 4
    act = 2 * tm * ld * 2 + 2 * tm * od_p * 4 + 3 * tm * hs_p * 4
    vmem_limit = int(min(100 << 20,
                         max(32 << 20, 1.5 * (resident + w_h_vmem + act))))

    out_p = pl.pallas_call(
        kernel,
        out_shape=jax.ShapeDtypeStruct((B_p, od_p), jnp.float32),
        grid_spec=pltpu.PrefetchScalarGridSpec(
            num_scalar_prefetch=0,
            grid=grid,
            in_specs=in_specs,
            out_specs=out_spec,
            scratch_shapes=scratch,
        ),
        compiler_params=pltpu.CompilerParams(
            dimension_semantics=dim_sem,
            vmem_limit_bytes=vmem_limit),
    )(*operands)

    return out_p[:B, :od]


# ----------------------------------------------------------------------------
# Deterministic parameter construction (PyTorch-style uniform(-1/sqrt(in), ..))
# ----------------------------------------------------------------------------
def init_params(key, latent_dim, hidden_size, num_hidden_layers, opt_dim):
    def linear(key, fan_in, fan_out):
        k_w, k_b = jax.random.split(key)
        bound = 1.0 / jnp.sqrt(fan_in)
        # stored already transposed: (in, out)
        w = jax.random.uniform(k_w, (fan_in, fan_out), jnp.float32, -bound, bound)
        b = jax.random.uniform(k_b, (fan_out,), jnp.float32, -bound, bound)
        return w, b

    keys = jax.random.split(key, num_hidden_layers + 2)
    w_in, b_in = linear(keys[0], latent_dim, hidden_size)

    params = {"w_in": w_in, "b_in": b_in}
    if num_hidden_layers > 0:
        w_hs, b_hs = [], []
        for l in range(num_hidden_layers):
            w, b = linear(keys[1 + l], hidden_size, hidden_size)
            w_hs.append(w)
            b_hs.append(b)
        params["w_h"] = jnp.stack(w_hs, axis=0)          # (L, H, H)
        params["b_h"] = jnp.stack(b_hs, axis=0)          # (L, H)

    w_out, b_out = linear(keys[-1], hidden_size, opt_dim)
    params["w_out"] = w_out
    params["b_out"] = b_out
    return params


def reference_forward(z, params, *, num_hidden_layers, emulate_bf16=False):
    def mm(x, w):
        if emulate_bf16:
            x = x.astype(jnp.bfloat16)
            w = w.astype(jnp.bfloat16)
        return jnp.dot(x, w, preferred_element_type=jnp.float32)

    h = jnp.maximum(mm(z, params["w_in"]) + params["b_in"], 0.0)
    for l in range(num_hidden_layers):
        h = jnp.maximum(mm(h, params["w_h"][l]) + params["b_h"][l], 0.0)
    return mm(h, params["w_out"]) + params["b_out"]


if __name__ == "__main__":
    # conf: latent_dim=16, hidden_size=32, num_hidden_layers=2, opt_dim=8
    batch, latent_dim, hidden_size, num_hidden_layers, opt_dim = 8, 16, 32, 2, 8

    key = jax.random.PRNGKey(0)
    k_params, k_z = jax.random.split(key)

    params = init_params(k_params, latent_dim, hidden_size,
                         num_hidden_layers, opt_dim)
    z = jax.random.normal(k_z, (batch, latent_dim), jnp.float32)

    # one-time weight prep (pad + bf16 cast) hoisted out of the forward path
    prepped, dims = prepare_params(params, num_hidden_layers=num_hidden_layers)

    out = generator_forward(z, prepped, dims, num_hidden_layers=num_hidden_layers)
    out = jax.block_until_ready(out)
    assert out.shape == (batch, opt_dim)

    # tight check against a reference that applies the same bf16 MXU casts
    ref_bf16 = reference_forward(z, params, num_hidden_layers=num_hidden_layers,
                                 emulate_bf16=True)
    assert jnp.allclose(out, ref_bf16, atol=1e-3, rtol=1e-3)

    # loose check against the pure-f32 PyTorch-equivalent math
    ref_f32 = reference_forward(z, params, num_hidden_layers=num_hidden_layers)
    assert jnp.allclose(out, ref_f32, atol=3e-2, rtol=3e-2)

    # regression check: num_hidden_layers == 0 (no zero-extent operands)
    params0 = init_params(k_params, latent_dim, hidden_size, 0, opt_dim)
    prepped0, dims0 = prepare_params(params0, num_hidden_layers=0)
    out0 = jax.block_until_ready(
        generator_forward(z, prepped0, dims0, num_hidden_layers=0))
    ref0 = reference_forward(z, params0, num_hidden_layers=0)
    assert out0.shape == (batch, opt_dim)
    assert jnp.allclose(out0, ref0, atol=3e-2, rtol=3e-2)

    # force the layer-streaming (v7x VMEM-budget) path at toy sizes
    out_s = jax.block_until_ready(
        generator_forward(z, prepped, dims, num_hidden_layers=num_hidden_layers,
                          weight_stream_limit_bytes=0))
    assert jnp.allclose(out_s, ref_bf16, atol=1e-3, rtol=1e-3)

    # multi-tile batch path (>=2 balanced 16-row-aligned tiles)
    zb = jax.random.normal(k_z, (40, latent_dim), jnp.float32)
    outb = jax.block_until_ready(
        generator_forward(zb, prepped, dims, num_hidden_layers=num_hidden_layers))
    refb = reference_forward(zb, params, num_hidden_layers=num_hidden_layers,
                             emulate_bf16=True)
    assert outb.shape == (40, opt_dim)
    assert jnp.allclose(outb, refb, atol=1e-3, rtol=1e-3)

    print("KERNEL_OK")
</pallas_src>

<mosaic_0001>
module attributes {stable_mosaic.version = 11 : i64} {
  func.func @generator_fused_kernel(%arg0: i32, %arg1: memref<16x16xbf16, #tpu.memory_space<vmem>>, %arg2: memref<16x128xbf16, #tpu.memory_space<vmem>>, %arg3: memref<1x128xf32, #tpu.memory_space<vmem>>, %arg4: memref<2x128x128xbf16, #tpu.memory_space<vmem>>, %arg5: memref<2x128xf32, #tpu.memory_space<vmem>>, %arg6: memref<128x128xbf16, #tpu.memory_space<vmem>>, %arg7: memref<1x128xf32, #tpu.memory_space<vmem>>, %arg8: memref<16x128xf32, #tpu.memory_space<vmem>>) attributes {dimension_semantics = [#tpu.dimension_semantics<parallel>], iteration_bounds = array<i64: 1>, scalar_prefetch = 0 : i64, scratch_operands = 0 : i64, tpu.core_type = #tpu.core_type<tc>, window_params = [{transform_indices = @transform_0, window_bounds = array<i64: 16, 16>}, {pipeline_mode = #tpu.pipeline_mode<synchronous>, transform_indices = @transform_1, window_bounds = array<i64: 16, 128>}, {pipeline_mode = #tpu.pipeline_mode<synchronous>, transform_indices = @transform_2, window_bounds = array<i64: 1, 128>}, {pipeline_mode = #tpu.pipeline_mode<synchronous>, transform_indices = @transform_3, window_bounds = array<i64: 2, 128, 128>}, {pipeline_mode = #tpu.pipeline_mode<synchronous>, transform_indices = @transform_4, window_bounds = array<i64: 2, 128>}, {pipeline_mode = #tpu.pipeline_mode<synchronous>, transform_indices = @transform_5, window_bounds = array<i64: 128, 128>}, {pipeline_mode = #tpu.pipeline_mode<synchronous>, transform_indices = @transform_6, window_bounds = array<i64: 1, 128>}, {transform_indices = @transform_7, window_bounds = array<i64: 16, 128>}]} {
    %c0 = arith.constant 0 : index
    %c0_0 = arith.constant 0 : index
    %0 = vector.load %arg1[%c0, %c0_0] : memref<16x16xbf16, #tpu.memory_space<vmem>>, vector<16x16xbf16>
    %c0_1 = arith.constant 0 : index
    %c0_2 = arith.constant 0 : index
    %1 = vector.load %arg2[%c0_1, %c0_2] : memref<16x128xbf16, #tpu.memory_space<vmem>>, vector<16x128xbf16>
    %cst = arith.constant dense<0.000000e+00> : vector<16x128xf32>
    %2 = tpu.matmul %0, %1, %cst {dimension_numbers = #tpu.dot_dimension_numbers<[1], [0], [0], [1], [0, 0, 1, 1], [], []>} : vector<16x16xbf16>, vector<16x128xbf16>, vector<16x128xf32> -> vector<16x128xf32>
    %c0_3 = arith.constant 0 : index
    %c0_4 = arith.constant 0 : index
    %3 = vector.load %arg3[%c0_3, %c0_4] : memref<1x128xf32, #tpu.memory_space<vmem>>, vector<1x128xf32>
    %4 = vector.broadcast %3 : vector<1x128xf32> to vector<16x128xf32>
    %5 = arith.addf %2, %4 : vector<16x128xf32>
    %cst_5 = arith.constant 0.000000e+00 : f32
    %6 = vector.broadcast %cst_5 : f32 to vector<16x128xf32>
    %7 = arith.maximumf %5, %6 : vector<16x128xf32>
    %8 = arith.truncf %7 : vector<16x128xf32> to vector<16x128xbf16>
    %c0_6 = arith.constant 0 : index
    %c0_7 = arith.constant 0 : index
    %c0_8 = arith.constant 0 : index
    %9 = vector.load %arg4[%c0_6, %c0_7, %c0_8] : memref<2x128x128xbf16, #tpu.memory_space<vmem>>, vector<1x128x128xbf16>
    %10 = vector.shape_cast %9 : vector<1x128x128xbf16> to vector<128x128xbf16>
    %cst_9 = arith.constant dense<0.000000e+00> : vector<16x128xf32>
    %11 = tpu.matmul %8, %10, %cst_9 {dimension_numbers = #tpu.dot_dimension_numbers<[1], [0], [0], [1], [0, 0, 1, 1], [], []>} : vector<16x128xbf16>, vector<128x128xbf16>, vector<16x128xf32> -> vector<16x128xf32>
    %c0_10 = arith.constant 0 : index
    %c0_11 = arith.constant 0 : index
    %12 = vector.load %arg5[%c0_10, %c0_11] : memref<2x128xf32, #tpu.memory_space<vmem>>, vector<1x128xf32>
    %13 = vector.broadcast %12 : vector<1x128xf32> to vector<16x128xf32>
    %14 = arith.addf %11, %13 : vector<16x128xf32>
    %cst_12 = arith.constant 0.000000e+00 : f32
    %15 = vector.broadcast %cst_12 : f32 to vector<16x128xf32>
    %16 = arith.maximumf %14, %15 : vector<16x128xf32>
    %17 = arith.truncf %16 : vector<16x128xf32> to vector<16x128xbf16>
    %c1 = arith.constant 1 : index
    %c0_13 = arith.constant 0 : index
    %c0_14 = arith.constant 0 : index
    %18 = vector.load %arg4[%c1, %c0_13, %c0_14] : memref<2x128x128xbf16, #tpu.memory_space<vmem>>, vector<1x128x128xbf16>
    %19 = vector.shape_cast %18 : vector<1x128x128xbf16> to vector<128x128xbf16>
    %cst_15 = arith.constant dense<0.000000e+00> : vector<16x128xf32>
    %20 = tpu.matmul %17, %19, %cst_15 {dimension_numbers = #tpu.dot_dimension_numbers<[1], [0], [0], [1], [0, 0, 1, 1], [], []>} : vector<16x128xbf16>, vector<128x128xbf16>, vector<16x128xf32> -> vector<16x128xf32>
    %c1_16 = arith.constant 1 : index
    %c0_17 = arith.constant 0 : index
    %21 = vector.load %arg5[%c1_16, %c0_17] : memref<2x128xf32, #tpu.memory_space<vmem>>, vector<1x128xf32>
    %22 = vector.broadcast %21 : vector<1x128xf32> to vector<16x128xf32>
    %23 = arith.addf %20, %22 : vector<16x128xf32>
    %cst_18 = arith.constant 0.000000e+00 : f32
    %24 = vector.broadcast %cst_18 : f32 to vector<16x128xf32>
    %25 = arith.maximumf %23, %24 : vector<16x128xf32>
    %26 = arith.truncf %25 : vector<16x128xf32> to vector<16x128xbf16>
    %c0_19 = arith.constant 0 : index
    %c0_20 = arith.constant 0 : index
    %27 = vector.load %arg6[%c0_19, %c0_20] : memref<128x128xbf16, #tpu.memory_space<vmem>>, vector<128x128xbf16>
    %cst_21 = arith.constant dense<0.000000e+00> : vector<16x128xf32>
    %28 = tpu.matmul %26, %27, %cst_21 {dimension_numbers = #tpu.dot_dimension_numbers<[1], [0], [0], [1], [0, 0, 1, 1], [], []>} : vector<16x128xbf16>, vector<128x128xbf16>, vector<16x128xf32> -> vector<16x128xf32>
    %c0_22 = arith.constant 0 : index
    %c0_23 = arith.constant 0 : index
    %29 = vector.load %arg7[%c0_22, %c0_23] : memref<1x128xf32, #tpu.memory_space<vmem>>, vector<1x128xf32>
    %30 = vector.broadcast %29 : vector<1x128xf32> to vector<16x128xf32>
    %31 = arith.addf %28, %30 : vector<16x128xf32>
    %c0_24 = arith.constant 0 : index
    %c0_25 = arith.constant 0 : index
    %32 = vector.load %arg8[%c0_24, %c0_25] : memref<16x128xf32, #tpu.memory_space<vmem>>, vector<16x128xf32>
    tpu.vector_store %arg8[%c0_24, %c0_25], %31 {strides = array<i32>} : memref<16x128xf32, #tpu.memory_space<vmem>>, vector<16x128xf32>,
    return
  }
  func.func @transform_0(%arg0: i32) -> (i32, i32) {
    %c0_i32 = arith.constant 0 : i32
    %c0_i32_0 = arith.constant 0 : i32
    return %arg0, %c0_i32 : i32, i32
  }
  func.func @transform_1(%arg0: i32) -> (i32, i32) {
    %c0_i32 = arith.constant 0 : i32
    %c0_i32_0 = arith.constant 0 : i32
    %c0_i32_1 = arith.constant 0 : i32
    return %c0_i32, %c0_i32_0 : i32, i32
  }
  func.func @transform_2(%arg0: i32) -> (i32, i32) {
    %c0_i32 = arith.constant 0 : i32
    %c0_i32_0 = arith.constant 0 : i32
    %c0_i32_1 = arith.constant 0 : i32
    return %c0_i32, %c0_i32_0 : i32, i32
  }
  func.func @transform_3(%arg0: i32) -> (i32, i32, i32) {
    %c0_i32 = arith.constant 0 : i32
    %c0_i32_0 = arith.constant 0 : i32
    %c0_i32_1 = arith.constant 0 : i32
    %c0_i32_2 = arith.constant 0 : i32
    return %c0_i32, %c0_i32_0, %c0_i32_1 : i32, i32, i32
  }
  func.func @transform_4(%arg0: i32) -> (i32, i32) {
    %c0_i32 = arith.constant 0 : i32
    %c0_i32_0 = arith.constant 0 : i32
    %c0_i32_1 = arith.constant 0 : i32
    return %c0_i32, %c0_i32_0 : i32, i32
  }
  func.func @transform_5(%arg0: i32) -> (i32, i32) {
    %c0_i32 = arith.constant 0 : i32
    %c0_i32_0 = arith.constant 0 : i32
    %c0_i32_1 = arith.constant 0 : i32
    return %c0_i32, %c0_i32_0 : i32, i32
  }
  func.func @transform_6(%arg0: i32) -> (i32, i32) {
    %c0_i32 = arith.constant 0 : i32
    %c0_i32_0 = arith.constant 0 : i32
    %c0_i32_1 = arith.constant 0 : i32
    return %c0_i32, %c0_i32_0 : i32, i32
  }
  func.func @transform_7(%arg0: i32) -> (i32, i32) {
    %c0_i32 = arith.constant 0 : i32
    %c0_i32_0 = arith.constant 0 : i32
    return %arg0, %c0_i32 : i32, i32
  }
}

</mosaic_0001>

<bundles_post_ra>
// kernel: tpu_custom_call.1
= control target key start
LH: loop header
LB: loop body
LE: loop exit
PB: predicated region body
PF: predicated region fallthrough
CT: control target
= control target key end

     0   :  { %12 = vsyncpa [#allocation3], 0  ;;  %s976_s0 = inlined_call_operand.hbm [shape: bf16[16,16], index: 0, kind: input, shape index: {}]   ;;  %s977_s1 = inlined_call_operand.hbm [shape: bf16[16,128], index: 1, kind: input, shape index: {}]   ;;  %s978_s2 = inlined_call_operand.vmem [shape: f32[1,128], index: 2, kind: input, shape index: {}]   ;;  %s979_s3 = inlined_call_operand.hbm [shape: bf16[2,128,128], index: 3, kind: input, shape index: {}]   ;;  %s980_s4 = inlined_call_operand.vmem [shape: f32[2,128], index: 4, kind: input, shape index: {}]   ;;  %s981_s5 = inlined_call_operand.hbm [shape: bf16[128,128], index: 5, kind: input, shape index: {}]   ;;  %s982_s6 = inlined_call_operand.vmem [shape: f32[1,128], index: 6, kind: input, shape index: {}]   ;;  %s983_s7 = inlined_call_operand.hbm [shape: f32[16,128], index: 7, kind: output, shape index: {}]  }
   0x1   :  { %13 = vsyncpa [#allocation6], 0 }
   0x2   :  { %14 = vsyncpa [#allocation9], 0 }
   0x3   :  { %15 = vsyncpa [#allocation4], 0  ;;  %s794_s24 = smov [#allocation5]   ;;  %s795_s26 = smov [#allocation2]  }
   0x4   :  { %s33_s25 = sshll.u32 %s794_s24, 4  ;;  %s21_s27 = sshll.u32 %s795_s26, 4  ;;  %s34_s25 = int_to_ptr.vmem [resolvable:$true] %s33_s25  ;;  %s845_s27 = int_to_ptr.vmem [resolvable:$true] %s21_s27 }
   0x5   :  { %s676_s30 = scalar_lea.hbm %s977_s1, 128 }
   0x6   :  { %p677_p0 = scmp.ne.s32.totalorder %s977_s1, %s676_s30  ;;  %p680_p1 = scmp.lt.u32.totalorder %s676_s30, %s977_s1 }
   0x8   :  { %p682_p2 = pnand %p680_p1, %p677_p0 }
   0xa   :  { %685 = shalt.err (!%p682_p2)
}
   0xb   :  { %s686_s12 = scalar_lea.vmem %s34_s25, 128  ;;  %p691_p4 = scmp.lt.s32.totalorder %s34_s25, %s34_s25 }
   0xc   :  { %p687_p3 = scmp.ne.s32.totalorder %s34_s25, %s686_s12  ;;  %p692_p5 = scmp.lt.s32.totalorder %s686_s12, %s686_s12 }
   0xe   :  { %p693_p6 = por %p692_p5, %p691_p4 }
  0x10   :  { %p694_p7 = pnand %p693_p6, %p687_p3 }
  0x12   :  { %697 = shalt.err (!%p694_p7)
}
  0x13   :  { %s796_s13 = smov 64   ;;  %s797_s14 = smov 4  }
  0x14   :  { %39 = dma.hbm_to_vmem [thread:$0]  %s977_s1, 128, %s34_s25, [#allocation6], %s796_s13, %s796_s13, %s797_s14  }
  0x15   :  { %s698_s19 = scalar_lea.hbm %s976_s0, 128 }
  0x16   :  { %p699_p8 = scmp.ne.s32.totalorder %s976_s0, %s698_s19  ;;  %p702_p9 = scmp.lt.u32.totalorder %s698_s19, %s976_s0 }
  0x18   :  { %p704_p10 = pnand %p702_p9, %p699_p8 }
  0x1a   :  { %707 = shalt.err (!%p704_p10)
}
  0x1b   :  { %s708_s24 = scalar_lea.vmem %s845_s27, 128  ;;  %p713_p12 = scmp.lt.s32.totalorder %s845_s27, %s845_s27 }
  0x1c   :  { %p709_p11 = scmp.ne.s32.totalorder %s845_s27, %s708_s24  ;;  %p714_p13 = scmp.lt.s32.totalorder %s708_s24, %s708_s24 }
  0x1e   :  { %p715_p0 = por %p714_p13, %p713_p12 }
  0x20   :  { %p716_p1 = pnand %p715_p0, %p709_p11 }
  0x22   :  { %719 = shalt.err (!%p716_p1)
}
  0x23   :  { %27 = dma.hbm_to_vmem [thread:$0]  %s976_s0, 128, %s845_s27, [#allocation3], %s796_s13, %s796_s13, %s797_s14  }
  0x24   :  { %s798_s26 = smov [#allocation7]   ;;  %s799_s29 = smov [#allocation8]  }
  0x25   :  { %s47_s28 = sshll.u32 %s798_s26, 4  ;;  %s61_s30 = sshll.u32 %s799_s29, 4  ;;  %s48_s28 = int_to_ptr.vmem [resolvable:$true] %s47_s28  ;;  %s882_s30 = int_to_ptr.vmem [resolvable:$true] %s61_s30 }
  0x26   :  { %s720_s10 = scalar_lea.hbm %s979_s3, 2048 }
  0x27   :  { %p721_p2 = scmp.ne.s32.totalorder %s979_s3, %s720_s10  ;;  %p724_p3 = scmp.lt.u32.totalorder %s720_s10, %s979_s3 }
  0x29   :  { %p726_p4 = pnand %p724_p3, %p721_p2 }
  0x2b   :  { %729 = shalt.err (!%p726_p4)
}
  0x2c   :  { %s730_s0 = scalar_lea.vmem %s48_s28, 2048  ;;  %p735_p6 = scmp.lt.s32.totalorder %s48_s28, %s48_s28 }
  0x2d   :  { %p731_p5 = scmp.ne.s32.totalorder %s48_s28, %s730_s0  ;;  %p736_p7 = scmp.lt.s32.totalorder %s730_s0, %s730_s0 }
  0x2f   :  { %p737_p8 = por %p736_p7, %p735_p6 }
  0x31   :  { %p738_p9 = pnand %p737_p8, %p731_p5 }
  0x33   :  { %741 = shalt.err (!%p738_p9)
}
  0x34   :  { %53 = dma.hbm_to_vmem [thread:$0]  %s979_s3, 2048, %s48_s28, [#allocation6], %s796_s13, %s796_s13, %s797_s14  }
  0x35   :  { %s742_s20 = scalar_lea.hbm %s981_s5, 1024 }
  0x36   :  { %p743_p10 = scmp.ne.s32.totalorder %s981_s5, %s742_s20  ;;  %p746_p11 = scmp.lt.u32.totalorder %s742_s20, %s981_s5 }
  0x38   :  { %p748_p12 = pnand %p746_p11, %p743_p10 }
  0x3a   :  { %751 = shalt.err (!%p748_p12)
}
  0x3b   :  { %s752_s1 = scalar_lea.vmem %s882_s30, 1024  ;;  %p757_p0 = scmp.lt.s32.totalorder %s882_s30, %s882_s30 }
  0x3c   :  { %p753_p13 = scmp.ne.s32.totalorder %s882_s30, %s752_s1  ;;  %p758_p1 = scmp.lt.s32.totalorder %s752_s1, %s752_s1 }
  0x3e   :  { %p759_p2 = por %p758_p1, %p757_p0 }
  0x40   :  { %p760_p3 = pnand %p759_p2, %p753_p13 }
  0x42   :  { %763 = shalt.err (!%p760_p3)
}
  0x43   :  { %67 = dma.hbm_to_vmem [thread:$0]  %s981_s5, 1024, %s882_s30, [#allocation9], %s796_s13, %s796_s13, %s797_s14  }
  0x44   :  { %786 = dma.done.wait [#allocation3], 128  }
  0x45   :  { %787 = vsyncadd [#allocation3], 4294967168 }
  0x46   :  { %788 = dma.done.wait [#allocation6], 2176  }
  0x47   :  { %789 = vsyncadd [#allocation6], 4294965120 }
  0x48   :  { %790 = dma.done.wait [#allocation9], 1024  }
  0x49   :  { %791 = vsyncadd [#allocation9], 4294966272  ;;  %v800_v0 = vmov 0.0   ;;  %vm801_vm0 = vmmov 0   ;;  %v650_v1 = vld [vmem:[#allocation5] sm:$0xff]   ;;  %v651_v2 = vld [vmem:[#allocation2] sm:$0xff]  }
  0x4a   :  { %573 = vmatprep.subr.bf16.mxu0 %v800_v0  ;;  %575 = vmatprep.mubr.msk.bf16.mxu0 %vm801_vm0, %v800_v0  ;;  %vm105_vm1 = vcmask 130048   ;;  %v652_v3 = vld [vmem:[#allocation7] sm:$0xff]   ;;  %v653_v4 = vld [vmem:[#allocation7 + $0x8] sm:$0xff]   ;;  %v654_v5 = vld [vmem:[#allocation7 + $0x10] sm:$0xff]   ;;  %s802_s8 = smov [#allocation10]  }
  0x4b   :  { %579 = vmatprep.subr.bf16.mxu1 %v800_v0  ;;  %595 = vmatprep.mubr.msk.bf16.mxu1 %vm801_vm0, %v800_v0  ;;  %v655_v6 = vld [vmem:[#allocation7 + $0x18] sm:$0xff]   ;;  %v656_v7 = vld [vmem:[#allocation7 + $0x20] sm:$0xff]   ;;  %v657_v8 = vld [vmem:[#allocation7 + $0x28] sm:$0xff]   ;;  %s499_s9 = sshll.u32 %s802_s8, 4  ;;  %s500_s9 = int_to_ptr.vmem [resolvable:$true] %s499_s9 }
  0x4c   :  { %574 = vmatpush3.bf16.msra.mxu0 %v650_v1  ;;  %580 = vmatpush3.bf16.msra.mxu1 %v652_v3  ;;  %v658_v9 = vld [vmem:[#allocation7 + $0x30] sm:$0xff]   ;;  %v659_v10 = vld [vmem:[#allocation7 + $0x38] sm:$0xff]   ;;  %v660_v11 = vld [vmem:[#allocation7 + $0x40] sm:$0xff]   ;;  %p769_p5 = scmp.lt.s32.totalorder %s500_s9, %s500_s9 }
  0x4d   :  { %599 = vmatprep.subr.bf16.mxu0 %v800_v0  ;;  %581 = vmatprep.subr.bf16.mxu1 %v800_v0  ;;  %v661_v12 = vld [vmem:[#allocation7 + $0x48] sm:$0xff]   ;;  %v662_v13 = vld [vmem:[#allocation7 + $0x50] sm:$0xff]   ;;  %v663_v14 = vld [vmem:[#allocation7 + $0x58] sm:$0xff]  }
  0x4e   :  { %v664_v15 = vld [vmem:[#allocation7 + $0x60] sm:$0xff]   ;;  %v665_v16 = vld [vmem:[#allocation7 + $0x68] sm:$0xff]   ;;  %v513_v17 = vld [vmem:[%s978_s2] ss:$0 sm:$0xff] }
  0x4f   :  { %576 = vmatmul.mubr.msk.bf16.vlgmr.msra.gmra.mrb[0].mxu0 %vm105_vm1, %v651_v2  ;;  %v666_v27 = vld [vmem:[#allocation7 + $0x70] sm:$0xff]   ;;  %v667_v28 = vld [vmem:[#allocation7 + $0x78] sm:$0xff]   ;;  %v668_v29 = vld [vmem:[#allocation8] sm:$0xff]  }
  0x50   :  { %615 = vmatprep.mubr.msk.bf16.mxu0 %vm801_vm0, %v800_v0  ;;  %582 = vmatpush3.bf16.msra.mxu1 %v653_v4  ;;  %v669_v30 = vld [vmem:[#allocation8 + $0x8] sm:$0xff]   ;;  %v670_v31 = vld [vmem:[#allocation8 + $0x10] sm:$0xff]   ;;  %v671_v32 = vld [vmem:[#allocation8 + $0x18] sm:$0xff]  }
  0x51   :  { %583 = vmatprep.subr.bf16.mxu1 %v800_v0  ;;  %600 = vmatpush3.bf16.msra.mxu0 %v660_v11  ;;  %v672_v33 = vld [vmem:[#allocation8 + $0x20] sm:$0xff]   ;;  %v673_v34 = vld [vmem:[#allocation8 + $0x28] sm:$0xff]   ;;  %v517_v35 = vld [vmem:[%s980_s4] ss:$0 sm:$0xff] }
  0x52   :  { %601 = vmatprep.subr.bf16.mxu0 %v800_v0  ;;  %v674_v45 = vld [vmem:[#allocation8 + $0x30] sm:$0xff]   ;;  %v675_v46 = vld [vmem:[#allocation8 + $0x38] sm:$0xff]  }
  0x53   :  { %v526_v47 = vld [vmem:[%s980_s4 + $0x1] ss:$0 sm:$0xff]  ;;  %v535_v57 = vld [vmem:[%s982_s6] ss:$0 sm:$0xff]  ;;  %s764_s4 = scalar_lea.vmem %s500_s9, 256 }
  0x54   :  { %584 = vmatpush3.bf16.msra.mxu1 %v654_v5  ;;  %p765_p4 = scmp.ne.s32.totalorder %s500_s9, %s764_s4  ;;  %p770_p6 = scmp.lt.s32.totalorder %s764_s4, %s764_s4 }
  0x55   :  { %585 = vmatprep.subr.bf16.mxu1 %v800_v0  ;;  %602 = vmatpush3.bf16.msra.mxu0 %v661_v12 }
  0x56   :  { %603 = vmatprep.subr.bf16.mxu0 %v800_v0  ;;  %p771_p7 = por %p770_p6, %p769_p5 }
  0x58   :  { %586 = vmatpush3.bf16.msra.mxu1 %v655_v6  ;;  %p772_p8 = pnand %p771_p7, %p765_p4 }
  0x59   :  { %587 = vmatprep.subr.bf16.mxu1 %v800_v0  ;;  %604 = vmatpush3.bf16.msra.mxu0 %v662_v13 }
  0x5a   :  { %605 = vmatprep.subr.bf16.mxu0 %v800_v0 }
  0x5c   :  { %588 = vmatpush3.bf16.msra.mxu1 %v656_v7 }
  0x5d   :  { %589 = vmatprep.subr.bf16.mxu1 %v800_v0  ;;  %606 = vmatpush3.bf16.msra.mxu0 %v663_v14 }
  0x5e   :  { %607 = vmatprep.subr.bf16.mxu0 %v800_v0 }
  0x60   :  { %590 = vmatpush3.bf16.msra.mxu1 %v657_v8 }
  0x61   :  { %591 = vmatprep.subr.bf16.mxu1 %v800_v0  ;;  %608 = vmatpush3.bf16.msra.mxu0 %v664_v15 }
  0x62   :  { %609 = vmatprep.subr.bf16.mxu0 %v800_v0 }
  0x64   :  { %592 = vmatpush3.bf16.msra.mxu1 %v658_v9 }
  0x65   :  { %593 = vmatprep.subr.bf16.mxu1 %v800_v0  ;;  %610 = vmatpush3.bf16.msra.mxu0 %v665_v16 }
  0x66   :  { %611 = vmatprep.subr.bf16.mxu0 %v800_v0 }
  0x68   :  { %594 = vmatpush3.bf16.msra.mxu1 %v659_v10 }
  0x69   :  { %619 = vmatprep.subr.bf16.mxu1 %v800_v0  ;;  %612 = vmatpush3.bf16.msra.mxu0 %v666_v27 }
  0x6a   :  { %613 = vmatprep.subr.bf16.mxu0 %v800_v0 }
  0x6d   :  { %614 = vmatpush3.bf16.msra.mxu0 %v667_v28 }
 0x122   :  { %v143_v18 = vpop.f32.mrb[0].mxu0 }
 0x123   :  { %v144_v19 = vadd.f32 %v513_v17, %v143_v18  ;;  %v577_v20 = vpop.f32.mrb[1].mxu0 }
 0x124   :  { %v146_v21 = vpop.f32.mrb[2].mxu0 }
 0x125   :  { %v147_v22 = vadd.f32 %v513_v17, %v146_v21  ;;  %v578_v23 = vpop.f32.mrb[3].mxu0  ;;  %v150_v24 = vmax.f32 %v144_v19, 0.0 }
 0x127   :  { %v151_v25 = vmax.f32 %v147_v22, 0.0 }
 0x129   :  { %v152_v26 = vpack.c.bf16 %v151_v25, %v150_v24 }
 0x12b   :  { %596 = vmatmul.mubr.bf16.vlgmr.msra.gmra.mrb[0].mxu1 %v152_v26 }
 0x12c   :  { %635 = vmatprep.mubr.msk.bf16.mxu1 %vm801_vm0, %v800_v0  ;;  %620 = vmatpush3.bf16.msra.mxu1 %v668_v29 }
 0x12d   :  { %621 = vmatprep.subr.bf16.mxu1 %v800_v0 }
 0x130   :  { %622 = vmatpush3.bf16.msra.mxu1 %v669_v30 }
 0x131   :  { %623 = vmatprep.subr.bf16.mxu1 %v800_v0 }
 0x134   :  { %624 = vmatpush3.bf16.msra.mxu1 %v670_v31 }
 0x135   :  { %625 = vmatprep.subr.bf16.mxu1 %v800_v0 }
 0x138   :  { %626 = vmatpush3.bf16.msra.mxu1 %v671_v32 }
 0x139   :  { %627 = vmatprep.subr.bf16.mxu1 %v800_v0 }
 0x13c   :  { %628 = vmatpush3.bf16.msra.mxu1 %v672_v33 }
 0x13d   :  { %629 = vmatprep.subr.bf16.mxu1 %v800_v0 }
 0x140   :  { %630 = vmatpush3.bf16.msra.mxu1 %v673_v34 }
 0x141   :  { %631 = vmatprep.subr.bf16.mxu1 %v800_v0 }
 0x144   :  { %632 = vmatpush3.bf16.msra.mxu1 %v674_v45 }
 0x145   :  { %633 = vmatprep.subr.bf16.mxu1 %v800_v0 }
 0x148   :  { %634 = vmatpush3.bf16.msra.mxu1 %v675_v46 }
 0x1fe   :  { %v256_v36 = vpop.f32.mrb[0].mxu1 }
 0x1ff   :  { %v257_v37 = vadd.f32 %v517_v35, %v256_v36  ;;  %v597_v38 = vpop.f32.mrb[1].mxu1 }
 0x200   :  { %v259_v39 = vpop.f32.mrb[2].mxu1 }
 0x201   :  { %v260_v40 = vadd.f32 %v517_v35, %v259_v39  ;;  %v598_v41 = vpop.f32.mrb[3].mxu1  ;;  %v263_v42 = vmax.f32 %v257_v37, 0.0 }
 0x203   :  { %v264_v43 = vmax.f32 %v260_v40, 0.0 }
 0x205   :  { %v265_v44 = vpack.c.bf16 %v264_v43, %v263_v42 }
 0x207   :  { %616 = vmatmul.mubr.bf16.vlgmr.msra.gmra.mrb[4].mxu0 %v265_v44 }
 0x2da   :  { %v370_v48 = vpop.f32.mrb[4].mxu0 }
 0x2db   :  { %v371_v49 = vadd.f32 %v526_v47, %v370_v48  ;;  %v617_v50 = vpop.f32.mrb[5].mxu0 }
 0x2dc   :  { %v373_v51 = vpop.f32.mrb[6].mxu0 }
 0x2dd   :  { %v374_v52 = vadd.f32 %v526_v47, %v373_v51  ;;  %v618_v53 = vpop.f32.mrb[7].mxu0  ;;  %v377_v54 = vmax.f32 %v371_v49, 0.0 }
 0x2df   :  { %v378_v55 = vmax.f32 %v374_v52, 0.0 }
 0x2e1   :  { %v379_v56 = vpack.c.bf16 %v378_v55, %v377_v54 }
 0x2e3   :  { %636 = vmatmul.mubr.bf16.vlgmr.msra.gmra.mrb[4].mxu1 %v379_v56 }
 0x3b6   :  { %v485_v58 = vpop.f32.mrb[4].mxu1 }
 0x3b7   :  { %v486_v59 = vadd.f32 %v535_v57, %v485_v58  ;;  %v637_v60 = vpop.f32.mrb[5].mxu1 }
 0x3b8   :  { %v488_v61 = vpop.f32.mrb[6].mxu1 }
 0x3b9   :  { %492 = vst [vmem:[#allocation10] sm:$0xff] %v486_v59  ;;  %v489_v62 = vadd.f32 %v535_v57, %v488_v61  ;;  %v638_v63 = vpop.f32.mrb[7].mxu1 }
 0x3bb   :  { %493 = vst [vmem:[#allocation10 + $0x8] sm:$0xff] %v489_v62 }
 0x3bc   :  { %775 = shalt.err (!%p772_p8)
}
 0x3bd   :  { %s776_s11 = scalar_lea.hbm %s983_s7, 256 }
 0x3be   :  { %p777_p9 = scmp.ne.s32.totalorder %s983_s7, %s776_s11  ;;  %p780_p10 = scmp.lt.u32.totalorder %s776_s11, %s983_s7 }
 0x3c0   :  { %p782_p11 = pnand %p780_p10, %p777_p9 }
 0x3c2   :  { %785 = shalt.err (!%p782_p11)
}
 0x3c3   :  { %s803_s27 = smov 128   ;;  %s804_s17 = smov 8  }
 0x3c4   :  { %505 = dma.vmem_to_hbm [thread:$0]  %s500_s9, 256, %s983_s7, [#allocation4], %s803_s27, %s803_s27, %s804_s17  }
 0x3c5   :  { %792 = dma.done.wait [#allocation4], 256  }
 0x3c6   :  { %793 = vsyncadd [#allocation4], 4294967040 }
 0x3c7   :  { %509 = vsyncpa [#allocation3], 1 }
 0x3c8   :  { %510 = vsyncpa [#allocation6], 1 }
 0x3c9   :  { %511 = vsyncpa [#allocation9], 1 }
 0x3ca   :  { %512 = vsyncpa [#allocation4], 1 }

</bundles_post_ra>
